<compile_context>
chip_gen: v7x
topology: tpu7x:2x2x1
jax: 0.10.0
libtpu: 0.0.40
codegen_flags: <defaults>
</compile_context>

<pallas_src>
import jax
import jax.numpy as jnp
from jax import lax
from jax.experimental import pallas as pl
from jax.experimental.pallas import tpu as pltpu


def siglip_text_kernel(sb_ref, texts_ref, w_ref, b_ref, images_ref, loss_ref,
                       t_sc, acc_sc):
    bj = pl.program_id(0)          # text-row tile (outer, changes slowest)
    bi = pl.program_id(1)          # image-row tile (inner, changes fastest)
    nbj = pl.num_programs(0)
    nbi = pl.num_programs(1)

    @pl.when((bj == 0) & (bi == 0))
    def _init():
        acc_sc[...] = jnp.zeros_like(acc_sc)

    # Project + L2-normalize this texts tile once per bj (reused for every bi).
    @pl.when(bi == 0)
    def _project():
        t = lax.dot_general(
            texts_ref[...], w_ref[...],
            dimension_numbers=(((1,), (1,)), ((), ())),     # contract H, no transpose
            preferred_element_type=jnp.float32) + b_ref[...]
        nrm = jnp.sqrt(jnp.sum(t * t, axis=1, keepdims=True))
        # reciprocal on the EUP slot; approx=False to hold the 1e-5 tolerance.
        t_sc[...] = t * pl.reciprocal(nrm + 1e-8, approx=False)

    # Pairwise logits tile: images(bi) @ t(bj)^T, trans-B form (MXU-native).
    logits = lax.dot_general(
        images_ref[...], t_sc[...],
        dimension_numbers=(((1,), (1,)), ((), ())),          # contract P
        preferred_element_type=jnp.float32)
    logits = logits * sb_ref[0] + sb_ref[1]                  # sb = [exp(scale), bias]

    # sum_ij log_sigmoid(labels_ij * z_ij) = sum_ij log_sigmoid(-z_ij) + trace(z),
    # with stable log_sigmoid(-z) = min(-z, 0) - log1p(exp(-|z|)).
    # Accumulate element-wise; defer the cross-lane reduce to the final step.
    acc_sc[...] += jnp.minimum(-logits, 0.0) - jnp.log1p(jnp.exp(-jnp.abs(logits)))

    @pl.when(bi == bj)
    def _diag():
        row = lax.broadcasted_iota(jnp.int32, logits.shape, 0)
        col = lax.broadcasted_iota(jnp.int32, logits.shape, 1)
        acc_sc[...] += jnp.where(row == col, logits, 0.0)

    @pl.when((bj == nbj - 1) & (bi == nbi - 1))
    def _finalize():
        n = images_ref.shape[0] * nbi                        # total batch B
        loss_ref[0, 0] = -jnp.sum(acc_sc[...]) / n


def text_encoder_forward(images, texts, proj_w, proj_b, logit_scale, logit_bias,
                         *, tb=None):
    """images: (B, P), texts: (B, H), proj_w: (P, H), proj_b: (P,)."""
    B, H = texts.shape
    P = proj_w.shape[0]
    assert images.shape == (B, P)
    if tb is None:
        tb = min(B, 128)            # production: 128 (v5e) / 256 (v6e, v7x)
    assert B % tb == 0 and (tb % 8 == 0 or tb == B)
    nb = B // tb

    texts = texts.astype(jnp.float32)
    images = images.astype(jnp.float32)
    w = proj_w.astype(jnp.float32)                     # (P, H): no host-side transpose
    b2 = proj_b.reshape(1, P).astype(jnp.float32)
    # exp(logit_scale) hoisted to the host (single scalar op); both scalars packed
    # into one 1-D SMEM array -> one small DMA instead of two padded (1,1) tiles.
    sb = jnp.stack([jnp.exp(jnp.asarray(logit_scale, jnp.float32).reshape(())),
                    jnp.asarray(logit_bias, jnp.float32).reshape(())])

    cost = pl.CostEstimate(
        flops=2 * B * H * P + 2 * B * B * P + 8 * B * B + 4 * B * P,
        transcendentals=2 * B * B + 2 * B,
        bytes_accessed=4 * (B * H + P * H + P + B * P + 2 + 1),
    )

    loss = pl.pallas_call(
        siglip_text_kernel,
        out_shape=jax.ShapeDtypeStruct((1, 1), jnp.float32),
        grid_spec=pltpu.PrefetchScalarGridSpec(
            num_scalar_prefetch=0,
            grid=(nb, nb),                                   # (bj outer, bi inner)
            in_specs=[
                pl.BlockSpec(memory_space=pltpu.MemorySpace.SMEM),   # [exp(scale), bias]
                pl.BlockSpec((tb, H), lambda bj, bi: (bj, 0)),       # texts tile (per bj)
                pl.BlockSpec((P, H), lambda bj, bi: (0, 0)),         # W, VMEM-resident
                pl.BlockSpec((1, P), lambda bj, bi: (0, 0)),         # proj_b, resident
                pl.BlockSpec((tb, P), lambda bj, bi: (bi, 0)),       # images tile (per bi)
            ],
            out_specs=pl.BlockSpec((1, 1), lambda bj, bi: (0, 0),
                                   memory_space=pltpu.MemorySpace.SMEM),
            scratch_shapes=[
                pltpu.VMEM((tb, P), jnp.float32),    # projected + normalized texts tile
                pltpu.VMEM((tb, tb), jnp.float32),   # element-wise loss partial sums
            ],
        ),
        compiler_params=pltpu.CompilerParams(
            # Both axes carry dependencies (loss accumulator + per-bj projection
            # scratch), so they must be "arbitrary"; see header for the v7x
            # megacore alternative (per-core partial losses).
            dimension_semantics=("arbitrary", "arbitrary"),
            vmem_limit_bytes=32 * 1024 * 1024,
        ),
        cost_estimate=cost,
    )(sb, texts, w, b2, images)
    return loss[0, 0]


def reference_forward(images, texts, proj_w, proj_b, logit_scale, logit_bias):
    t = texts @ proj_w.T + proj_b
    t = t / (jnp.linalg.norm(t, axis=1, keepdims=True) + 1e-8)
    logits = images @ t.T * jnp.exp(logit_scale) + logit_bias
    n = logits.shape[0]
    labels = 2.0 * jnp.eye(n) - 1.0
    return -jnp.sum(jax.nn.log_sigmoid(labels * logits)) / n


if __name__ == "__main__":
    # Small shapes consistent with the forward pass:
    #   batch B=16, text hidden H=32, projection_dim P=64, batch tile tb=8
    #   -> a 2x2 grid that exercises every pl.when path (init / projection reuse /
    #      diagonal gating / finalize).
    B, H, P = 16, 32, 64
    TB = 8
    init_scale, init_bias = 10.0, -10.0

    key = jax.random.PRNGKey(0)
    k_txt, k_img, k_w, k_b = jax.random.split(key, 4)

    texts = jax.random.normal(k_txt, (B, H), dtype=jnp.float32)   # precomputed text embeddings
    images = jax.random.normal(k_img, (B, P), dtype=jnp.float32)  # image embeddings

    # nn.Linear(H, P) parameters, deterministic init
    proj_w = jax.random.normal(k_w, (P, H), dtype=jnp.float32) * (1.0 / jnp.sqrt(H))
    proj_b = jax.random.normal(k_b, (P,), dtype=jnp.float32) * 0.01

    logit_scale = jnp.log(jnp.float32(init_scale))   # nn.Parameter(log(init_scale))
    logit_bias = jnp.float32(init_bias)              # nn.Parameter(init_bias)

    loss = text_encoder_forward(images, texts, proj_w, proj_b,
                                logit_scale, logit_bias, tb=TB)
    loss = jax.block_until_ready(loss)

    ref = reference_forward(images, texts, proj_w, proj_b, logit_scale, logit_bias)
    assert jnp.allclose(loss, ref, rtol=1e-5, atol=1e-5), (loss, ref)

    print("KERNEL_OK")
</pallas_src>

<mosaic_0001>
module attributes {stable_mosaic.version = 11 : i64} {
  func.func @siglip_text_kernel(%arg0: i32, %arg1: i32, %arg2: memref<2xf32, #tpu.memory_space<smem>>, %arg3: memref<8x32xf32, #tpu.memory_space<vmem>>, %arg4: memref<64x32xf32, #tpu.memory_space<vmem>>, %arg5: memref<1x64xf32, #tpu.memory_space<vmem>>, %arg6: memref<8x64xf32, #tpu.memory_space<vmem>>, %arg7: memref<1x1xf32, #tpu.memory_space<smem>>, %arg8: memref<8x64xf32, #tpu.memory_space<vmem>>, %arg9: memref<8x8xf32, #tpu.memory_space<vmem>>) attributes {dimension_semantics = [#tpu.dimension_semantics<arbitrary>, #tpu.dimension_semantics<arbitrary>], iteration_bounds = array<i64: 2, 2>, scalar_prefetch = 0 : i64, scratch_operands = 2 : i64, tpu.core_type = #tpu.core_type<tc>, window_params = [{transform_indices = @transform_0, window_bounds = array<i64: 2>}, {transform_indices = @transform_1, window_bounds = array<i64: 8, 32>}, {pipeline_mode = #tpu.pipeline_mode<synchronous>, transform_indices = @transform_2, window_bounds = array<i64: 64, 32>}, {pipeline_mode = #tpu.pipeline_mode<synchronous>, transform_indices = @transform_3, window_bounds = array<i64: 1, 64>}, {transform_indices = @transform_4, window_bounds = array<i64: 8, 64>}, {transform_indices = @transform_5, window_bounds = array<i64: 1, 1>}]} {
    %c0_i32 = arith.constant 0 : i32
    %0 = arith.cmpi eq, %arg0, %c0_i32 : i32
    %c0_i32_0 = arith.constant 0 : i32
    %1 = arith.cmpi eq, %arg1, %c0_i32_0 : i32
    %2 = arith.andi %0, %1 : i1
    %3 = arith.extui %2 : i1 to i32
    %c0_i32_1 = arith.constant 0 : i32
    %4 = arith.cmpi ne, %3, %c0_i32_1 : i32
    scf.if %4 {
      %cst_18 = arith.constant 0.000000e+00 : f32
      %38 = vector.broadcast %cst_18 : f32 to vector<8x8xf32>
      %c0_19 = arith.constant 0 : index
      %c0_20 = arith.constant 0 : index
      %39 = vector.load %arg9[%c0_19, %c0_20] : memref<8x8xf32, #tpu.memory_space<vmem>>, vector<8x8xf32>
      tpu.vector_store %arg9[%c0_19, %c0_20], %38 {strides = array<i32>} : memref<8x8xf32, #tpu.memory_space<vmem>>, vector<8x8xf32>,
    } else {
    }
    %c0_i32_2 = arith.constant 0 : i32
    %5 = arith.cmpi eq, %arg1, %c0_i32_2 : i32
    %6 = arith.extui %5 : i1 to i32
    %c0_i32_3 = arith.constant 0 : i32
    %7 = arith.cmpi ne, %6, %c0_i32_3 : i32
    scf.if %7 {
      %c0_18 = arith.constant 0 : index
      %c0_19 = arith.constant 0 : index
      %38 = vector.load %arg3[%c0_18, %c0_19] : memref<8x32xf32, #tpu.memory_space<vmem>>, vector<8x32xf32>
      %c0_20 = arith.constant 0 : index
      %c0_21 = arith.constant 0 : index
      %39 = vector.load %arg4[%c0_20, %c0_21] : memref<64x32xf32, #tpu.memory_space<vmem>>, vector<64x32xf32>
      %cst_22 = arith.constant dense<0.000000e+00> : vector<8x64xf32>
      %40 = tpu.matmul %38, %39, %cst_22 {dimension_numbers = #tpu.dot_dimension_numbers<[1], [1], [0], [0], [0, 0, 1, 0], [], []>} : vector<8x32xf32>, vector<64x32xf32>, vector<8x64xf32> -> vector<8x64xf32>
      %c0_23 = arith.constant 0 : index
      %c0_24 = arith.constant 0 : index
      %41 = vector.load %arg5[%c0_23, %c0_24] : memref<1x64xf32, #tpu.memory_space<vmem>>, vector<1x64xf32>
      %42 = vector.broadcast %41 : vector<1x64xf32> to vector<8x64xf32>
      %43 = arith.addf %40, %42 : vector<8x64xf32>
      %44 = arith.mulf %43, %43 : vector<8x64xf32>
      %cst_25 = arith.constant dense<0.000000e+00> : vector<8xf32>
      %45 = vector.multi_reduction <add>, %44, %cst_25 [1] : vector<8x64xf32> to vector<8xf32>
      %46 = vector.shape_cast %45 : vector<8xf32> to vector<8x1xf32>
      %47 = math.sqrt %46 : vector<8x1xf32>
      %cst_26 = arith.constant 9.99999993E-9 : f32
      %48 = vector.broadcast %cst_26 : f32 to vector<8x1xf32>
      %49 = arith.addf %47, %48 : vector<8x1xf32>
      %50 = tpu.reciprocal %49 : vector<8x1xf32> -> vector<8x1xf32>
      %51 = vector.broadcast %50 : vector<8x1xf32> to vector<8x64xf32>
      %52 = arith.mulf %43, %51 : vector<8x64xf32>
      %c0_27 = arith.constant 0 : index
      %c0_28 = arith.constant 0 : index
      %53 = vector.load %arg8[%c0_27, %c0_28] : memref<8x64xf32, #tpu.memory_space<vmem>>, vector<8x64xf32>
      tpu.vector_store %arg8[%c0_27, %c0_28], %52 {strides = array<i32>} : memref<8x64xf32, #tpu.memory_space<vmem>>, vector<8x64xf32>,
    } else {
    }
    %c0 = arith.constant 0 : index
    %c0_4 = arith.constant 0 : index
    %8 = vector.load %arg6[%c0, %c0_4] : memref<8x64xf32, #tpu.memory_space<vmem>>, vector<8x64xf32>
    %c0_5 = arith.constant 0 : index
    %c0_6 = arith.constant 0 : index
    %9 = vector.load %arg8[%c0_5, %c0_6] : memref<8x64xf32, #tpu.memory_space<vmem>>, vector<8x64xf32>
    %cst = arith.constant dense<0.000000e+00> : vector<8x8xf32>
    %10 = tpu.matmul %8, %9, %cst {dimension_numbers = #tpu.dot_dimension_numbers<[1], [1], [0], [0], [0, 0, 1, 0], [], []>} : vector<8x64xf32>, vector<8x64xf32>, vector<8x8xf32> -> vector<8x8xf32>
    %c0_7 = arith.constant 0 : index
    %11 = memref.load %arg2[%c0_7] : memref<2xf32, #tpu.memory_space<smem>>
    %12 = vector.broadcast %11 : f32 to vector<8x8xf32>
    %13 = arith.mulf %10, %12 : vector<8x8xf32>
    %c1 = arith.constant 1 : index
    %14 = memref.load %arg2[%c1] : memref<2xf32, #tpu.memory_space<smem>>
    %15 = vector.broadcast %14 : f32 to vector<8x8xf32>
    %16 = arith.addf %13, %15 : vector<8x8xf32>
    %c0_8 = arith.constant 0 : index
    %c0_9 = arith.constant 0 : index
    %17 = vector.load %arg9[%c0_8, %c0_9] : memref<8x8xf32, #tpu.memory_space<vmem>>, vector<8x8xf32>
    %cst_10 = arith.constant 0.000000e+00 : f32
    %18 = vector.broadcast %cst_10 : f32 to vector<8x8xf32>
    %19 = arith.subf %18, %16 : vector<8x8xf32>
    %cst_11 = arith.constant 0.000000e+00 : f32
    %20 = vector.broadcast %cst_11 : f32 to vector<8x8xf32>
    %21 = arith.minimumf %19, %20 : vector<8x8xf32>
    %22 = math.absf %16 : vector<8x8xf32>
    %cst_12 = arith.constant 0.000000e+00 : f32
    %23 = vector.broadcast %cst_12 : f32 to vector<8x8xf32>
    %24 = arith.subf %23, %22 : vector<8x8xf32>
    %25 = math.exp %24 : vector<8x8xf32>
    %26 = math.log1p %25 : vector<8x8xf32>
    %27 = arith.subf %21, %26 : vector<8x8xf32>
    %28 = arith.addf %17, %27 : vector<8x8xf32>
    %c0_13 = arith.constant 0 : index
    %c0_14 = arith.constant 0 : index
    %29 = vector.load %arg9[%c0_13, %c0_14] : memref<8x8xf32, #tpu.memory_space<vmem>>, vector<8x8xf32>
    tpu.vector_store %arg9[%c0_13, %c0_14], %28 {strides = array<i32>} : memref<8x8xf32, #tpu.memory_space<vmem>>, vector<8x8xf32>,
    %30 = arith.cmpi eq, %arg1, %arg0 : i32
    %31 = arith.extui %30 : i1 to i32
    %c0_i32_15 = arith.constant 0 : i32
    %32 = arith.cmpi ne, %31, %c0_i32_15 : i32
    scf.if %32 {
      %38 = tpu.iota {dimensions = array<i32: 0>} : vector<8x8xi32>
      %39 = tpu.iota {dimensions = array<i32: 1>} : vector<8x8xi32>
      %c0_18 = arith.constant 0 : index
      %c0_19 = arith.constant 0 : index
      %40 = vector.load %arg9[%c0_18, %c0_19] : memref<8x8xf32, #tpu.memory_space<vmem>>, vector<8x8xf32>
      %41 = arith.cmpi eq, %38, %39 : vector<8x8xi32>
      %cst_20 = arith.constant 0.000000e+00 : f32
      %42 = vector.broadcast %cst_20 : f32 to vector<8x8xf32>
      %43 = arith.select %41, %16, %42 : vector<8x8xi1>, vector<8x8xf32>
      %44 = arith.addf %40, %43 : vector<8x8xf32>
      %c0_21 = arith.constant 0 : index
      %c0_22 = arith.constant 0 : index
      %45 = vector.load %arg9[%c0_21, %c0_22] : memref<8x8xf32, #tpu.memory_space<vmem>>, vector<8x8xf32>
      tpu.vector_store %arg9[%c0_21, %c0_22], %44 {strides = array<i32>} : memref<8x8xf32, #tpu.memory_space<vmem>>, vector<8x8xf32>,
    } else {
    }
    %c1_i32 = arith.constant 1 : i32
    %33 = arith.cmpi eq, %arg0, %c1_i32 : i32
    %c1_i32_16 = arith.constant 1 : i32
    %34 = arith.cmpi eq, %arg1, %c1_i32_16 : i32
    %35 = arith.andi %33, %34 : i1
    %36 = arith.extui %35 : i1 to i32
    %c0_i32_17 = arith.constant 0 : i32
    %37 = arith.cmpi ne, %36, %c0_i32_17 : i32
    scf.if %37 {
      %c0_18 = arith.constant 0 : index
      %c0_19 = arith.constant 0 : index
      %38 = vector.load %arg9[%c0_18, %c0_19] : memref<8x8xf32, #tpu.memory_space<vmem>>, vector<8x8xf32>
      %39 = vector.shape_cast %38 : vector<8x8xf32> to vector<1x8x8xf32>
      %cst_20 = arith.constant dense<0.000000e+00> : vector<1xf32>
      %40 = vector.multi_reduction <add>, %39, %cst_20 [1, 2] : vector<1x8x8xf32> to vector<1xf32>
      %41 = vector.shape_cast %40 : vector<1xf32> to vector<1x1x1xf32>
      %42 = vector.extract %41[0, 0, 0] : f32 from vector<1x1x1xf32>
      %cst_21 = arith.constant 0.000000e+00 : f32
      %43 = arith.subf %cst_21, %42 : f32
      %cst_22 = arith.constant 1.600000e+01 : f32
      %44 = arith.divf %43, %cst_22 : f32
      %c0_23 = arith.constant 0 : index
      %c0_24 = arith.constant 0 : index
      %45 = memref.load %arg7[%c0_23, %c0_24] : memref<1x1xf32, #tpu.memory_space<smem>>
      memref.store %44, %arg7[%c0_23, %c0_24] : memref<1x1xf32, #tpu.memory_space<smem>>
    } else {
    }
    return
  }
  func.func @transform_0(%arg0: i32, %arg1: i32) -> i32 {
    %c0_i32 = arith.constant 0 : i32
    %c0_i32_0 = arith.constant 0 : i32
    return %c0_i32 : i32
  }
  func.func @transform_1(%arg0: i32, %arg1: i32) -> (i32, i32) {
    %c0_i32 = arith.constant 0 : i32
    %c0_i32_0 = arith.constant 0 : i32
    return %arg0, %c0_i32 : i32, i32
  }
  func.func @transform_2(%arg0: i32, %arg1: i32) -> (i32, i32) {
    %c0_i32 = arith.constant 0 : i32
    %c0_i32_0 = arith.constant 0 : i32
    %c0_i32_1 = arith.constant 0 : i32
    return %c0_i32, %c0_i32_0 : i32, i32
  }
  func.func @transform_3(%arg0: i32, %arg1: i32) -> (i32, i32) {
    %c0_i32 = arith.constant 0 : i32
    %c0_i32_0 = arith.constant 0 : i32
    %c0_i32_1 = arith.constant 0 : i32
    return %c0_i32, %c0_i32_0 : i32, i32
  }
  func.func @transform_4(%arg0: i32, %arg1: i32) -> (i32, i32) {
    %c0_i32 = arith.constant 0 : i32
    %c0_i32_0 = arith.constant 0 : i32
    return %arg1, %c0_i32 : i32, i32
  }
  func.func @transform_5(%arg0: i32, %arg1: i32) -> (i32, i32) {
    %c0_i32 = arith.constant 0 : i32
    %c0_i32_0 = arith.constant 0 : i32
    %c0_i32_1 = arith.constant 0 : i32
    return %c0_i32, %c0_i32_0 : i32, i32
  }
}

</mosaic_0001>

<bundles_post_ra>
// kernel: tpu_custom_call.1
= control target key start
LH: loop header
LB: loop body
LE: loop exit
PB: predicated region body
PF: predicated region fallthrough
CT: control target
= control target key end

     0   :  { %10 = vsyncpa [#allocation6], 0  ;;  %s1036_s0 = inlined_call_operand.vmem [shape: f32[2], index: 0, kind: input, shape index: {}]   ;;  %s1037_s1 = inlined_call_operand.vmem [shape: f32[16,32], index: 1, kind: input, shape index: {}]   ;;  %s1038_s2 = inlined_call_operand.vmem [shape: f32[64,32], index: 2, kind: input, shape index: {}]   ;;  %s1039_s3 = inlined_call_operand.vmem [shape: f32[1,64], index: 3, kind: input, shape index: {}]   ;;  %s1040_s4 = inlined_call_operand.vmem [shape: f32[16,64], index: 4, kind: input, shape index: {}]   ;;  %s1041_s5 = inlined_call_operand.hbm [shape: f32[1,1], index: 5, kind: output, shape index: {}]  }
   0x1   :  { %11 = vsyncpa [#allocation5], 0  ;;  %s879_s18 = smov 0   ;;  %s881_s19 = smov 0  }
   0x2   :  { %s883_s20 = smov 0   ;;  %s885_s21 = smov 0  }
   0x3   :  { %s887_s22 = smov 0  }
   0x4 LB: > { %s614_s23 = sadd.s32 4294967295, %s839_s22   ;;  %s26_s24 = sadd.s32 1, %s831_s20  ;;  %s839_s22 = sphi %s887_s22, %s17_s22   ;;  %s835_s21 = sphi %s885_s21, %s1049_s21   ;;  %s831_s20 = sphi %s883_s20, %s1048_s20   ;;  %s827_s19 = sphi %s881_s19, %s1047_s19   ;;  %s823_s18 = sphi %s879_s18, %s1046_s18  }
   0x5   : > { %p27_p0 = scmp.ge.s32.totalorder %s26_s24, 2  ;;  %s29_s25 = sadd.s32 1, %s835_s21 }
   0x6   : > { %p615_p1 = scmp.ge.s32.totalorder %s839_s22, 1  ;;  %p170_p2 = scmp.lt.s32.totalorder %s839_s22, 5 }
   0x7   : > { %s1051_s24 = smov (%p27_p0, %s26_s24), 0  ;;  %s1053_s25 = smov (!%p27_p0, %s29_s25), %s835_s21 }
   0x8   : > { %p912_p3 = pnand %p615_p1, %p170_p2  ;;  %p31_p4 = scmp.ge.s32.totalorder %s1053_s25, 2 }
   0x9   : > { %p918_p5 = scmp.eq.s32.totalorder %s614_s23, 0  ;;  %s183_s30 = sshll.u32 %s1036_s0, 4  ;;  %s184_s30 = int_to_ptr.vmem [resolvable:$true] %s183_s30 }
   0xa   : > { %p702_p6 = pneg %p912_p3  ;;  %s1055_s25 = smov (%p31_p4, %s1053_s25), 0 }
   0xb   : > { %s766_s6 = scalar_lea.vmem %s184_s30, 16  ;;  %p774_p12 = scmp.lt.s32.totalorder %s184_s30, %s184_s30 }
   0xc   : > { %p703_p7 = pnand %p918_p5, %p702_p6  ;;  %p767_p8 = scmp.ne.s32.totalorder %s184_s30, %s766_s6 }
   0xd   : > { %p775_p13 = scmp.lt.s32.totalorder %s766_s6, %s766_s6 }
   0xe   : > { %p768_p9 = pneg %p703_p7 }
   0xf   : > { %p776_p0 = por %p775_p13, %p774_p12 }
  0x10   : > { %p769_p10 = pnand %p768_p9, %p767_p8 }
  0x12   : > { %p770_p11 = pneg %p769_p10 }
  0x14   : > { %p777_p1 = pnand %p776_p0, %p770_p11 }
  0x16   : > { %780 = shalt.err (!%p777_p1)
}
  0x17   : > { %s841_s7 = smov [#allocation4]   ;;  %216 = sbr.rel (%p912_p3) target bundleno = 977 (0x3d1), region = 40 }
  0x18   : > { %705 = dma.vmem_to_smem (!%p703_p7), %s184_s30, 16, %s841_s7, [#allocation6]  }
  0x1e   : > { %814 = dma.done.wait (%p918_p5), [#allocation6], 16  }
  0x1f   : > { %816 = vsyncadd (%p918_p5), [#allocation6], 4294967280 }
  0x20   : > { %222 = sfence }
  0x21   : > { %p243_p2 = scmp.lt.s32.totalorder %s827_s19, 1  ;;  %p247_p4 = scmp.lt.s32.totalorder %s823_s18, 1 }
  0x22   : > { %p251_p6 = scmp.eq.s32.totalorder %s827_s19, 0  ;;  %p252_p7 = scmp.eq.s32.totalorder %s823_s18, 0 }
  0x23   : > { %s244_s8 = scalar_select %p243_p2, %s827_s19, 1 }
  0x24   : > { %s248_s9 = scalar_select %p247_p4, %s823_s18, 1 }
  0x25   : > { %s620_s10 = sshll.u32 %s244_s8, 3  ;;  %p253_p3 = pnand %p252_p7, %p251_p6 }
  0x26   : > { %s946_s13 = scalar_lea.vmem %s1037_s1, %s620_s10  ;;  %s621_s14 = sshll.u32 %s248_s9, 3  ;;  %vm257_vm0 = vcmask (!%p253_p3), 64512   ;;  %v842_v0 = vmov (!%p253_p3), 0.0  }
  0x27   : > { %s951_s17 = scalar_lea.vmem %s1040_s4, %s621_s14  ;;  %256 = sbr.rel (%p253_p3) target bundleno = 46 (0x2e), region = 48  ;;  %258 = vst.msk [vmem:[#allocation3] sm:$0xff] (!%p253_p3), %vm257_vm0, %v842_v0 }
  0x2e PF: > { %p622_p5 = scmp.ne.s32.totalorder %s823_s18, 0 }
  0x2f   : > { %v263_v1 = vld [vmem:[%s1038_s2] sm:$0xff] (!%p622_p5)  ;;  %v264_v2 = vld [vmem:[%s1038_s2 + $0x8] sm:$0xff] (!%p622_p5)  ;;  %vm278_vm1 = vcmask (!%p622_p5), 261120   ;;  %v843_v3 = vmov (!%p622_p5), 0.0|0.0   ;;  %vm844_vm3 = vmmov (!%p622_p5), 0   ;;  %v845_v6 = vmov (!%p622_p5), 0.0  }
  0x30   : > { %261 = sbr.rel (%p622_p5) target bundleno = 471 (0x1d7), region = 52  ;;  %676 = vmatprep.subr.bf16.mxu0 (!%p622_p5), %v843_v3  ;;  %v677_v4 = vpack.c.bf16 (!%p622_p5), %v264_v2, %v263_v1  ;;  %vm962_vm2 = vmpackc.low (!%p622_p5), %vm278_vm1, %vm278_vm1  ;;  %668 = vmatprep.mubr.msk.f32.mxu0 (!%p622_p5), %vm844_vm3, %v845_v6  ;;  %v265_v7 = vld [vmem:[%s1038_s2 + $0x10] sm:$0xff] (!%p622_p5)  ;;  %v266_v8 = vld [vmem:[%s1038_s2 + $0x18] sm:$0xff] (!%p622_p5)  ;;  %vm377_vm4 = vcmask (!%p622_p5), 523264  }
  0x31   : > { %v681_v9 = vpack.c.bf16 (!%p622_p5), %v266_v8, %v265_v7  ;;  %v267_v10 = vld [vmem:[%s1038_s2 + $0x20] sm:$0xff] (!%p622_p5)  ;;  %v268_v11 = vld [vmem:[%s1038_s2 + $0x28] sm:$0xff] (!%p622_p5)  ;;  %v269_v13 = vld [vmem:[%s1038_s2 + $0x30] sm:$0xff] (!%p622_p5) }
  0x32   : > { %679 = vmatpush3.bf16.xpose.msk.msra.mxu0 (!%p622_p5), %vm962_vm2, %v677_v4  ;;  %v685_v12 = vpack.c.bf16 (!%p622_p5), %v268_v11, %v267_v10  ;;  %v270_v14 = vld [vmem:[%s1038_s2 + $0x38] sm:$0xff] (!%p622_p5)  ;;  %v262_v16 = vld [vmem:[%s946_s13] sm:$0xff] (!%p622_p5) }
  0x33   : > { %680 = vmatprep.subr.bf16.mxu0 (!%p622_p5), %v843_v3  ;;  %v689_v15 = vpack.c.bf16 (!%p622_p5), %v270_v14, %v269_v13  ;;  %v623_v17 = vld [vmem:[%s1039_s3] ss:$0 sm:$0xff] (!%p622_p5) }
  0x3a   : > { %683 = vmatpush3.bf16.xpose.msk.msra.mxu0 %vm962_vm2, %v681_v9 }
  0x3b   : > { %684 = vmatprep.subr.bf16.mxu0 %v843_v3 }
  0x42   : > { %687 = vmatpush3.bf16.xpose.msk.msra.mxu0 %vm962_vm2, %v685_v12 }
  0x43   : > { %688 = vmatprep.subr.bf16.mxu0 %v843_v3 }
  0x4a   : > { %691 = vmatpush3.bf16.xpose.msk.msra.mxu0 %vm962_vm2, %v689_v15 }
  0x51   : > { %669 = vmatmul.mubr.msk.f32.vlgmr.msra.gmra.mrb[0].mxu0 %vm278_vm1, %v262_v16 }
 0x124   : > { %v372_v18 = vpop.f32.mrb[0].mxu0 }
 0x125   : > { %v373_v19 = vadd.f32 %v623_v17, %v372_v18  ;;  %v670_v20 = vpop.f32.mrb[1].mxu0 }
 0x127   : > { %v376_v21 = vmul.f32 %v373_v19, %v373_v19 }
 0x129   : > { %v378_v22 = vsel %vm377_vm4, %v376_v21, 0.0 }
 0x12a   : > { %379 = vadd.xlane.f32.xlu0 %v378_v22 }
 0x1b7   : > { %v380_v23 = vpop.xlane.xlu0 %379 }
 0x1b8   : > { %758 = vrsqrt.f32 %v380_v23  ;;  %vm383_vm5 = vcmp.eq.f32.partialorder %v380_v23, inf  ;;  %v386_v26 = vand.u32 2147483648, %v380_v23  ;;  %vm385_vm6 = vcmp.eq.f32.partialorder %v380_v23, 0.0 }
 0x1c2   : > { %v759_v24 = vpop.eup %758 }
 0x1c3   : > { %v382_v25 = vmul.f32 %v759_v24, %v380_v23 }
 0x1c5   : > { %v384_v27 = vsel %vm383_vm5, %v380_v23, %v382_v25 }
 0x1c6   : > { %v387_v28 = vsel %vm385_vm6, %v386_v26, %v384_v27 }
 0x1c7   : > { %v388_v29 = vadd.f32 1e-08, %v387_v28 }
 0x1c9   : > { %760 = vrcp.f32 %v388_v29 }
 0x1d3   : > { %v761_v30 = vpop.eup %760 }
 0x1d4   : > { %v390_v31 = vmul.f32 %v761_v30, %v373_v19 }
 0x1d6   : > { %391 = vst.msk [vmem:[#allocation2] sm:$0xff] %vm377_vm4, %v390_v31 }
 0x1d7 PF: > { %vm394_vm7 = vcmask 523264   ;;  %v846_v33 = vmov 0.0   ;;  %vm847_vm8 = vmmov 0   ;;  %v392_v34 = vld [vmem:[%s951_s17] sm:$0xff]  ;;  %s471_s13 = sld [smem:[#allocation4]]  ;;  %s635_s29 = sld [smem:[#allocation4 + $0x1]] }
 0x1d8   : > { %671 = vmatprep.subr.mxu0 %v846_v33  ;;  %673 = vmatprep.mubr.msk.f32.mxu0 %vm847_vm8, %v846_v33  ;;  %v477_v54 = vld [vmem:[#allocation3] sm:$0xff]  ;;  %vm495_vm10 = vcmask 64512   ;;  %p636_p8 = scmp.ne.s32.totalorder %s823_s18, %s827_s19 }
 0x1d9   : > { %v501_v58 = vlaneseq (!%p636_p8) }
 0x1db   : > { %v502_v59 = vshrl.u32 (!%p636_p8), %v501_v58, 7  ;;  %v504_v60 = vand.u32 (!%p636_p8), 127, %v501_v58 }
 0x1dd   : > { %v393_v32 = vld [vmem:[#allocation2] sm:$0xff]  ;;  %v472_v35 = vstv %s471_s13  ;;  %v475_v37 = vstv %s635_s29  ;;  %vm506_vm11 = vcmp.eq.s32.totalorder (!%p636_p8), %v502_v59, %v504_v60 }
 0x1de   : > { %672 = vmatpush3.xpose.msk.msra.mxu0 %vm394_vm7, %v393_v32 }
 0x1e1   : > { %674 = vmatmul.mubr.msk.f32.vlgmr.msra.gmra.mrb[0].mxu0 %vm394_vm7, %v392_v34 }
 0x2b4   : > { %v467_v36 = vpop.f32.mrb[0].mxu0 }
 0x2b5   : > { %v473_v38 = vmul.f32 %v472_v35, %v467_v36  ;;  %v675_v39 = vpop.f32.mrb[1].mxu0 }
 0x2b7   : > { %v476_v40 = vadd.f32 %v475_v37, %v473_v38 }
 0x2b9   : > { %v480_v41 = vand.u32 2147483647, %v476_v40  ;;  %v478_v48 = vsub.f32 0.0, %v476_v40  ;;  %v507_v62 = vsel (!%p636_p8), %vm506_vm11, %v476_v40, 0.0 }
 0x2bb   : > { %v481_v42 = vsub.f32 0.0, %v480_v41  ;;  %v479_v53 = vmin.f32 %v478_v48, 0.0 }
 0x2bd   : > { %v482_v43 = vmul.f32 1.442695, %v481_v42 }
 0x2bf   : > { %762 = vpow2.f32 %v482_v43 }
 0x2c9   : > { %v763_v44 = vpop.eup %762 }
 0x2ca   : > { %v484_v45 = vadd.f32 1.0, %v763_v44  ;;  %v487_v46 = vmul.f32 -0.5, %v763_v44  ;;  %v490_v49 = vand.u32 2147483647, %v763_v44 }
 0x2cc   : > { %764 = vlog2.f32 %v484_v45  ;;  %v488_v47 = vadd.f32 1.0, %v487_v46  ;;  %vm491_vm9 = vcmp.lt.f32.partialorder %v490_v49, 0.0004427343 }
 0x2ce   : > { %v489_v52 = vmul.f32 %v763_v44, %v488_v47 }
 0x2d6   : > { %v765_v50 = vpop.eup %764 }
 0x2d7   : > { %v486_v51 = vmul.f32 0.6931472, %v765_v50 }
 0x2d8   : > { %500 = sbr.rel (%p636_p8) target bundleno = 745 (0x2e9), region = 56 }
 0x2d9   : > { %v492_v55 = vsel %vm491_vm9, %v489_v52, %v486_v51 }
 0x2da   : > { %v493_v56 = vsub.f32 %v479_v53, %v492_v55 }
 0x2dc   : > { %v494_v57 = vadd.f32 %v493_v56, %v477_v54 }
 0x2de   : > { %496 = vst.msk [vmem:[#allocation3] sm:$0xff] %vm495_vm10, %v494_v57 }
 0x2e5   : > { %v505_v61 = vld [vmem:[#allocation3] sm:$0xff] }
 0x2e6   : > { %v508_v63 = vadd.f32 %v507_v62, %v505_v61 }
 0x2e8   : > { %509 = vst.msk [vmem:[#allocation3] sm:$0xff] %vm495_vm10, %v508_v63 }
 0x2e9 PF: > { %p510_p9 = scmp.eq.s32.totalorder %s827_s19, 1  ;;  %p511_p10 = scmp.eq.s32.totalorder %s823_s18, 1 }
 0x2eb   : > { %p512_p11 = pnand %p511_p10, %p510_p9 }
 0x2ed   : > { %515 = sbr.rel (%p512_p11) target bundleno = 962 (0x3c2), region = 60 }
 0x2ef   : > { %v516_v0 = vld [vmem:[#allocation3] sm:$0xff] (!%p512_p11) }
 0x2f0   : > { %v517_v1 = vsel (!%p512_p11), %vm495_vm10, %v516_v0, 0.0 }
 0x2f1   : > { %518 = vadd.xlane.f32.xlu0 (!%p512_p11), %v517_v1 }
 0x37e   : > { %v519_v2 = vpop.xlane.xlu0 %518 }
 0x37f   : > { %v520_v3 = vrot.slane %v519_v2, 4 }
 0x381   : > { %v521_v4 = vadd.f32 %v520_v3, %v519_v2 }
 0x383   : > { %v522_v5 = vrot.slane %v521_v4, 2 }
 0x385   : > { %v523_v6 = vadd.f32 %v522_v5, %v521_v4 }
 0x387   : > { %v524_v7 = vrot.slane %v523_v6, 1 }
 0x389   : > { %v525_v8 = vadd.f32 %v524_v7, %v523_v6 }
 0x38b   : > { %692 = vpush %v525_v8 }
 0x3bc   : > { %s693_s17 = spop %692 }
 0x3bd   : > { %s527_s30 = ssub.f32 0.0, %s693_s17 }
 0x3bf   : > { %s530_s6 = smul.f32 0.0625, %s527_s30 }
 0x3c1   : > { %532 = sst [smem:[#allocation7]] %s530_s6 }
 0x3c2 PF: > { %p708_p12 = scmp.eq.s32.totalorder %s614_s23, 3  ;;  %s781_s7 = scalar_lea.hbm %s1041_s5, 16 }
 0x3c3   : > { %p782_p13 = scmp.ne.s32.totalorder %s1041_s5, %s781_s7  ;;  %p787_p2 = scmp.lt.u32.totalorder %s781_s7, %s1041_s5 }
 0x3c5   : > { %p783_p0 = pnand %p782_p13, %p708_p12 }
 0x3c7   : > { %p784_p1 = pneg %p783_p0 }
 0x3c9   : > { %p789_p4 = pnand %p787_p2, %p784_p1 }
 0x3cb   : > { %792 = shalt.err (!%p789_p4)
}
 0x3cc   : > { %s848_s12 = smov [#allocation7]  }
 0x3cd   : > { %699 = dma.smem_to_hbm (%p708_p12), %s848_s12, 16, %s1041_s5, [#allocation5]  }
 0x3ce   : > { %818 = dma.done.wait (%p708_p12), [#allocation5], 16  }
 0x3cf   : > { %820 = vsyncadd (%p708_p12), [#allocation5], 4294967280 }
 0x3d0   : > { %546 = sfence }
 0x3d1 PF: > { %s17_s22 = sadd.s32 1, %s839_s22   ;;  %s1046_s18 = smov %s831_s20 }
 0x3d2   : > { %p14_p6 = scmp.ge.s32.totalorder %s17_s22, 6   ;;  %s1047_s19 = smov %s835_s21 }
 0x3d3   : > { %s1048_s20 = smov %s1051_s24  ;;  %s1049_s21 = smov %s1055_s25 }
 0x3d4   :  { %16 = sbr.rel (!%p14_p6) target bundleno = 4 (0x4), region = 92 }
 0x3db   :  { %552 = vsyncpa [#allocation5], 1 }
 0x3dc   :  { %554 = vsyncpa [#allocation5 + $0x1], 1 }
 0x3dd   :  { %555 = vsyncpa [#allocation6], 1 }
 0x3de   :  { %557 = vsyncpa [#allocation6 + $0x1], 1 }

</bundles_post_ra>
